<compile_context>
chip_gen: v7x
topology: tpu7x:2x2x1
jax: 0.10.0
libtpu: 0.0.40
codegen_flags: <defaults>
</compile_context>

<pallas_src>
import numpy as np
import jax
import jax.numpy as jnp
from jax import lax
from jax.experimental import pallas as pl
from jax.experimental.pallas import tpu as pltpu


TN = 256  # batch-tile rows (multiple of 8; lane-dense output blocks of width 256)


def _naive_kernel(x_ref, w1_ref, b1_ref, w2_ref, b2_ref, out_ref):
    # x_ref  : (TN, D) bf16  -- flattened input tile (batch on sublanes here)
    # w1_ref : (H, D)  bf16  -- fc1 weight, PyTorch (out, in) layout, resident
    # b1_ref : (H, 1)  f32   -- fc1 bias as a column
    # w2_ref : (H, 1)  f32   -- fc2 weight as a column (out_dim == 1)
    # b2_ref : (1, 1)  f32   -- fc2 bias
    # out_ref: (2, TN) f32   -- row 0 = mu (logits), row 1 = Bernoulli entropy
    #
    # hT[h, t] = sum_d w1[h, d] * x[t, d]  -- NT matmul on the MXU; the result
    # keeps the batch on the lane axis, so everything downstream is lane-dense.
    ht = lax.dot_general(
        w1_ref[...], x_ref[...],
        dimension_numbers=(((1,), (1,)), ((), ())),
        preferred_element_type=jnp.float32,
    )                                                        # (H, TN) f32
    ht = jnp.maximum(ht + b1_ref[...], 0.0)                  # bias + ReLU (f32, VPU)

    # fc2 (out_dim == 1): elementwise multiply + sublane reduction (XLU slot),
    # deliberately NOT an MXU matmul (would be 1-lane-wide output).
    mu = jnp.sum(ht * w2_ref[...], axis=0, keepdims=True) + b2_ref[...]   # (1, TN)

    # Bernoulli(logits=mu).entropy() == softplus(mu) - mu * sigmoid(mu)
    ent = jax.nn.softplus(mu) - mu * jax.nn.sigmoid(mu)                   # (1, TN)

    out_ref[...] = jnp.concatenate([mu, ent], axis=0)        # lane-dense (2, TN)


def naive_forward(x_nchw, w1, b1, w2, b2, *, tile_n=TN):
    """Naive.forward.

    w1: (H, D), b1: (H,), w2: (1, H), b2: (1,)  -- PyTorch nn.Linear layout.
    Returns (mu, unc): mu (N, 1) distribution logits, unc (N,) entropies.
    """
    N = x_nchw.shape[0]
    D = int(np.prod(x_nchw.shape[1:]))
    H = w1.shape[0]

    x = x_nchw.reshape(N, D).astype(jnp.float32)
    n_pad = int(pl.cdiv(N, tile_n)) * tile_n
    if n_pad != N:
        x = jnp.pad(x, ((0, n_pad - N), (0, 0)))

    # bf16 on the MXU path (native on v6e/v7x; also halves x/w1 HBM traffic).
    x_bf = x.astype(jnp.bfloat16)
    w1_bf = w1.astype(jnp.bfloat16)
    b1_col = b1.reshape(H, 1).astype(jnp.float32)
    w2_col = w2.reshape(H, 1).astype(jnp.float32)
    b2_2d = b2.reshape(1, 1).astype(jnp.float32)

    grid = (n_pad // tile_n,)
    out = pl.pallas_call(
        _naive_kernel,
        grid=grid,
        in_specs=[
            pl.BlockSpec((tile_n, D), lambda i: (i, 0)),   # x: tiled over batch
            pl.BlockSpec((H, D), lambda i: (0, 0)),        # w1: resident
            pl.BlockSpec((H, 1), lambda i: (0, 0)),        # b1: resident
            pl.BlockSpec((H, 1), lambda i: (0, 0)),        # w2: resident
            pl.BlockSpec((1, 1), lambda i: (0, 0)),        # b2: resident
        ],
        out_specs=pl.BlockSpec((2, tile_n), lambda i: (0, i)),
        out_shape=jax.ShapeDtypeStruct((2, n_pad), jnp.float32),
        compiler_params=pltpu.CompilerParams(
            dimension_semantics=("parallel",)),            # megacore on v7x
    )(x_bf, w1_bf, b1_col, w2_col, b2_2d)

    mu = out[0, :N].reshape(N, 1)
    unc = out[1, :N]
    # TODO(synk): torch version returns a list of distribution *objects*; we
    # return their parameters (mu, the Bernoulli logits) instead.
    return mu, unc


def _reference_forward(x_nchw, w1, b1, w2, b2):
    """Pure-JAX reference (matches the kernel's bf16 input precision)."""
    N = x_nchw.shape[0]
    x = x_nchw.reshape(N, -1).astype(jnp.bfloat16).astype(jnp.float32)
    w1f = w1.astype(jnp.bfloat16).astype(jnp.float32)
    h = jnp.maximum(
        jnp.dot(x, w1f.T, precision=lax.Precision.HIGHEST) + b1.reshape(1, -1), 0.0)
    mu = jnp.sum(h * w2.reshape(1, -1), axis=-1, keepdims=True) + b2.reshape(1, 1)
    ent = jax.nn.softplus(mu) - mu * jax.nn.sigmoid(mu)
    return mu, ent[:, 0]


if __name__ == "__main__":
    key = jax.random.PRNGKey(0)
    k_x, k_w1, k_b1, k_w2, k_b2 = jax.random.split(key, 5)

    N, C, Hs, Ws = 2, 4, 16, 16        # NCHW input
    D = C * Hs * Ws                    # 1024
    HID = 32

    x = jax.random.normal(k_x, (N, C, Hs, Ws), dtype=jnp.float32)
    # PyTorch nn.Linear layout: weight is (out_features, in_features)
    w1 = jax.random.normal(k_w1, (HID, D), dtype=jnp.float32) * (1.0 / np.sqrt(D))
    b1 = jax.random.normal(k_b1, (HID,), dtype=jnp.float32) * 0.1
    w2 = jax.random.normal(k_w2, (1, HID), dtype=jnp.float32) * (1.0 / np.sqrt(HID))
    b2 = jax.random.normal(k_b2, (1,), dtype=jnp.float32) * 0.1

    mu, unc = naive_forward(x, w1, b1, w2, b2)
    jax.block_until_ready((mu, unc))

    mu_ref, unc_ref = _reference_forward(x, w1, b1, w2, b2)
    np.testing.assert_allclose(np.asarray(mu), np.asarray(mu_ref), rtol=1e-3, atol=1e-3)
    np.testing.assert_allclose(np.asarray(unc), np.asarray(unc_ref), rtol=1e-3, atol=1e-3)

    assert mu.shape == (N, 1) and unc.shape == (N,)
    print("KERNEL_OK")
</pallas_src>

<mosaic_0001>
module attributes {stable_mosaic.version = 11 : i64} {
  func.func @_naive_kernel(%arg0: i32, %arg1: memref<256x1024xbf16, #tpu.memory_space<vmem>>, %arg2: memref<32x1024xbf16, #tpu.memory_space<vmem>>, %arg3: memref<32x1xf32, #tpu.memory_space<vmem>>, %arg4: memref<32x1xf32, #tpu.memory_space<vmem>>, %arg5: memref<1x1xf32, #tpu.memory_space<vmem>>, %arg6: memref<2x256xf32, #tpu.memory_space<vmem>>) attributes {dimension_semantics = [#tpu.dimension_semantics<parallel>], iteration_bounds = array<i64: 1>, scalar_prefetch = 0 : i64, scratch_operands = 0 : i64, tpu.core_type = #tpu.core_type<tc>, window_params = [{transform_indices = @transform_0, window_bounds = array<i64: 256, 1024>}, {pipeline_mode = #tpu.pipeline_mode<synchronous>, transform_indices = @transform_1, window_bounds = array<i64: 32, 1024>}, {pipeline_mode = #tpu.pipeline_mode<synchronous>, transform_indices = @transform_2, window_bounds = array<i64: 32, 1>}, {pipeline_mode = #tpu.pipeline_mode<synchronous>, transform_indices = @transform_3, window_bounds = array<i64: 32, 1>}, {pipeline_mode = #tpu.pipeline_mode<synchronous>, transform_indices = @transform_4, window_bounds = array<i64: 1, 1>}, {transform_indices = @transform_5, window_bounds = array<i64: 2, 256>}]} {
    %c0 = arith.constant 0 : index
    %c0_0 = arith.constant 0 : index
    %0 = vector.load %arg2[%c0, %c0_0] : memref<32x1024xbf16, #tpu.memory_space<vmem>>, vector<32x1024xbf16>
    %c0_1 = arith.constant 0 : index
    %c0_2 = arith.constant 0 : index
    %1 = vector.load %arg1[%c0_1, %c0_2] : memref<256x1024xbf16, #tpu.memory_space<vmem>>, vector<256x1024xbf16>
    %cst = arith.constant dense<0.000000e+00> : vector<32x256xf32>
    %2 = tpu.matmul %0, %1, %cst {dimension_numbers = #tpu.dot_dimension_numbers<[1], [1], [0], [0], [0, 0, 1, 0], [], []>} : vector<32x1024xbf16>, vector<256x1024xbf16>, vector<32x256xf32> -> vector<32x256xf32>
    %c0_3 = arith.constant 0 : index
    %c0_4 = arith.constant 0 : index
    %3 = vector.load %arg3[%c0_3, %c0_4] : memref<32x1xf32, #tpu.memory_space<vmem>>, vector<32x1xf32>
    %4 = vector.broadcast %3 : vector<32x1xf32> to vector<32x256xf32>
    %5 = arith.addf %2, %4 : vector<32x256xf32>
    %cst_5 = arith.constant 0.000000e+00 : f32
    %6 = vector.broadcast %cst_5 : f32 to vector<32x256xf32>
    %7 = arith.maximumf %5, %6 : vector<32x256xf32>
    %c0_6 = arith.constant 0 : index
    %c0_7 = arith.constant 0 : index
    %8 = vector.load %arg4[%c0_6, %c0_7] : memref<32x1xf32, #tpu.memory_space<vmem>>, vector<32x1xf32>
    %9 = vector.broadcast %8 : vector<32x1xf32> to vector<32x256xf32>
    %10 = arith.mulf %7, %9 : vector<32x256xf32>
    %cst_8 = arith.constant dense<0.000000e+00> : vector<256xf32>
    %11 = vector.multi_reduction <add>, %10, %cst_8 [0] : vector<32x256xf32> to vector<256xf32>
    %12 = vector.shape_cast %11 : vector<256xf32> to vector<1x256xf32>
    %c0_9 = arith.constant 0 : index
    %c0_10 = arith.constant 0 : index
    %13 = vector.load %arg5[%c0_9, %c0_10] : memref<1x1xf32, #tpu.memory_space<vmem>>, vector<1x1xf32>
    %14 = vector.broadcast %13 : vector<1x1xf32> to vector<1x256xf32>
    %15 = arith.addf %12, %14 : vector<1x256xf32>
    %cst_11 = arith.constant 0.000000e+00 : f32
    %16 = vector.broadcast %cst_11 : f32 to vector<1x256xf32>
    %17 = arith.maximumf %15, %16 : vector<1x256xf32>
    %18 = vector.broadcast %cst_11 : f32 to vector<1x256xf32>
    %19 = arith.subf %15, %18 : vector<1x256xf32>
    %20 = arith.cmpf one, %19, %19 : vector<1x256xf32>
    %21 = vector.broadcast %cst_11 : f32 to vector<1x256xf32>
    %22 = arith.addf %15, %21 : vector<1x256xf32>
    %23 = math.absf %19 : vector<1x256xf32>
    %cst_12 = arith.constant 0.000000e+00 : f32
    %24 = vector.broadcast %cst_12 : f32 to vector<1x256xf32>
    %25 = arith.subf %24, %23 : vector<1x256xf32>
    %26 = math.exp %25 : vector<1x256xf32>
    %27 = math.log1p %26 : vector<1x256xf32>
    %28 = arith.addf %17, %27 : vector<1x256xf32>
    %29 = arith.select %20, %22, %28 : vector<1x256xi1>, vector<1x256xf32>
    %30 = arith.negf %15 : vector<1x256xf32>
    %31 = math.exp %30 : vector<1x256xf32>
    %cst_13 = arith.constant 1.000000e+00 : f32
    %32 = vector.broadcast %cst_13 : f32 to vector<1x256xf32>
    %33 = arith.addf %32, %31 : vector<1x256xf32>
    %34 = arith.divf %32, %33 : vector<1x256xf32>
    %35 = arith.mulf %15, %34 : vector<1x256xf32>
    %36 = arith.subf %29, %35 : vector<1x256xf32>
    %37 = tpu.concatenate %15, %36 in 0 : vector<1x256xf32>, vector<1x256xf32> -> vector<2x256xf32>
    %c0_14 = arith.constant 0 : index
    %c0_15 = arith.constant 0 : index
    %38 = vector.load %arg6[%c0_14, %c0_15] : memref<2x256xf32, #tpu.memory_space<vmem>>, vector<2x256xf32>
    tpu.vector_store %arg6[%c0_14, %c0_15], %37 {strides = array<i32>} : memref<2x256xf32, #tpu.memory_space<vmem>>, vector<2x256xf32>,
    return
  }
  func.func @transform_0(%arg0: i32) -> (i32, i32) {
    %c0_i32 = arith.constant 0 : i32
    %c0_i32_0 = arith.constant 0 : i32
    return %arg0, %c0_i32 : i32, i32
  }
  func.func @transform_1(%arg0: i32) -> (i32, i32) {
    %c0_i32 = arith.constant 0 : i32
    %c0_i32_0 = arith.constant 0 : i32
    %c0_i32_1 = arith.constant 0 : i32
    return %c0_i32, %c0_i32_0 : i32, i32
  }
  func.func @transform_2(%arg0: i32) -> (i32, i32) {
    %c0_i32 = arith.constant 0 : i32
    %c0_i32_0 = arith.constant 0 : i32
    %c0_i32_1 = arith.constant 0 : i32
    return %c0_i32, %c0_i32_0 : i32, i32
  }
  func.func @transform_3(%arg0: i32) -> (i32, i32) {
    %c0_i32 = arith.constant 0 : i32
    %c0_i32_0 = arith.constant 0 : i32
    %c0_i32_1 = arith.constant 0 : i32
    return %c0_i32, %c0_i32_0 : i32, i32
  }
  func.func @transform_4(%arg0: i32) -> (i32, i32) {
    %c0_i32 = arith.constant 0 : i32
    %c0_i32_0 = arith.constant 0 : i32
    %c0_i32_1 = arith.constant 0 : i32
    return %c0_i32, %c0_i32_0 : i32, i32
  }
  func.func @transform_5(%arg0: i32) -> (i32, i32) {
    %c0_i32 = arith.constant 0 : i32
    %c0_i32_0 = arith.constant 0 : i32
    return %c0_i32, %arg0 : i32, i32
  }
}

</mosaic_0001>

<bundles_post_ra>
// kernel: tpu_custom_call.1
= control target key start
LH: loop header
LB: loop body
LE: loop exit
PB: predicated region body
PF: predicated region fallthrough
CT: control target
= control target key end

     0   :  { %s1722_s0 = inlined_call_operand.hbm [shape: bf16[256,1024], index: 0, kind: input, shape index: {}]   ;;  %s1723_s1 = inlined_call_operand.hbm [shape: bf16[32,1024], index: 1, kind: input, shape index: {}]   ;;  %s1724_s2 = inlined_call_operand.vmem [shape: f32[32,1], index: 2, kind: input, shape index: {}]   ;;  %s1725_s3 = inlined_call_operand.vmem [shape: f32[32,1], index: 3, kind: input, shape index: {}]   ;;  %s1726_s4 = inlined_call_operand.<no memory space> [shape: f32[1,1], index: 4, kind: input, shape index: {}]   ;;  %s1727_s5 = inlined_call_operand.hbm [shape: f32[2,256], index: 5, kind: output, shape index: {}]  }
   0x1   :  { %v10_v0 = vstv %s1726_s4 }
   0x2   :  { %11 = vst [vmem:[#allocation2] sm:$0x1] %v10_v0 }
   0x3   :  { %12 = vsyncpa [#allocation4], 0 }
   0x4   :  { %13 = vsyncpa [#allocation7], 0 }
   0x5   :  { %14 = vsyncpa [#allocation5], 0  ;;  %s1579_s20 = smov [#allocation3]   ;;  %s1507_s24 = scalar_lea.hbm %s1722_s0, 16384 }
   0x6   :  { %s20_s21 = sshll.u32 %s1579_s20, 4  ;;  %p1508_p0 = scmp.ne.s32.totalorder %s1722_s0, %s1507_s24  ;;  %s21_s21 = int_to_ptr.vmem [resolvable:$true] %s20_s21 }
   0x7   :  { %p1511_p1 = scmp.lt.u32.totalorder %s1507_s24, %s1722_s0 }
   0x9   :  { %p1513_p2 = pnand %p1511_p1, %p1508_p0 }
   0xb   :  { %1516 = shalt.err (!%p1513_p2)
}
   0xc   :  { %s1517_s4 = scalar_lea.vmem %s21_s21, 16384  ;;  %p1522_p4 = scmp.lt.s32.totalorder %s21_s21, %s21_s21 }
   0xd   :  { %p1518_p3 = scmp.ne.s32.totalorder %s21_s21, %s1517_s4  ;;  %p1523_p5 = scmp.lt.s32.totalorder %s1517_s4, %s1517_s4 }
   0xf   :  { %p1524_p6 = por %p1523_p5, %p1522_p4 }
  0x11   :  { %p1525_p7 = pnand %p1524_p6, %p1518_p3 }
  0x13   :  { %1528 = shalt.err (!%p1525_p7)
}
  0x14   :  { %s1580_s29 = smov 512   ;;  %s1581_s30 = smov 32  }
  0x15   :  { %26 = dma.hbm_to_vmem [thread:$0]  %s1722_s0, 16384, %s21_s21, [#allocation4], %s1580_s29, %s1580_s29, %s1581_s30  }
  0x16   :  { %s1582_s8 = smov [#allocation6]   ;;  %s1529_s12 = scalar_lea.hbm %s1723_s1, 2048 }
  0x17   :  { %s32_s9 = sshll.u32 %s1582_s8, 4  ;;  %p1530_p8 = scmp.ne.s32.totalorder %s1723_s1, %s1529_s12  ;;  %s33_s9 = int_to_ptr.vmem [resolvable:$true] %s32_s9 }
  0x18   :  { %p1533_p9 = scmp.lt.u32.totalorder %s1529_s12, %s1723_s1 }
  0x1a   :  { %p1535_p10 = pnand %p1533_p9, %p1530_p8 }
  0x1c   :  { %1538 = shalt.err (!%p1535_p10)
}
  0x1d   :  { %s1539_s17 = scalar_lea.vmem %s33_s9, 2048  ;;  %p1544_p12 = scmp.lt.s32.totalorder %s33_s9, %s33_s9 }
  0x1e   :  { %p1540_p11 = scmp.ne.s32.totalorder %s33_s9, %s1539_s17  ;;  %p1545_p13 = scmp.lt.s32.totalorder %s1539_s17, %s1539_s17 }
  0x20   :  { %p1546_p0 = por %p1545_p13, %p1544_p12 }
  0x22   :  { %p1547_p1 = pnand %p1546_p0, %p1540_p11 }
  0x24   :  { %1550 = shalt.err (!%p1547_p1)
}
  0x25   :  { %38 = dma.hbm_to_vmem [thread:$0]  %s1723_s1, 2048, %s33_s9, [#allocation7], %s1580_s29, %s1580_s29, %s1581_s30  }
  0x26   :  { %1573 = dma.done.wait [#allocation4], 16384  }
  0x27   :  { %1574 = vsyncadd [#allocation4], 4294950912 }
  0x28   :  { %1575 = dma.done.wait [#allocation7], 2048  }
  0x29   :  { %1576 = vsyncadd [#allocation7], 4294965248  ;;  %v67_v1 = vld [vmem:[#allocation3] sm:$0xff]  ;;  %v69_v3 = vld [vmem:[#allocation3 + $0x10] sm:$0xff]  ;;  %vm1273_vm4 = vcmask 1040384  }
  0x2a   :  { %v71_v2 = vld [vmem:[#allocation3 + $0x20] sm:$0xff]  ;;  %v73_v5 = vld [vmem:[#allocation3 + $0x30] sm:$0xff] }
  0x2b   :  { %v1321_v4 = vcombine.high %v67_v1, %v71_v2  ;;  %v1320_v6 = vcombine.low %v67_v1, %v71_v2  ;;  %v75_v7 = vld [vmem:[#allocation3 + $0x40] sm:$0xff]  ;;  %v1325_v9 = vcombine.high %v69_v3, %v73_v5  ;;  %v1324_v10 = vcombine.low %v69_v3, %v73_v5  ;;  %v77_v12 = vld [vmem:[#allocation3 + $0x50] sm:$0xff] }
  0x2c   :  { %v79_v8 = vld [vmem:[#allocation3 + $0x60] sm:$0xff]  ;;  %v81_v13 = vld [vmem:[#allocation3 + $0x70] sm:$0xff] }
  0x2d   :  { %v1329_v11 = vcombine.high %v75_v7, %v79_v8  ;;  %939 = vmatprep.subr.bf16.mxu1 %v1321_v4  ;;  %v1333_v14 = vcombine.high %v77_v12, %v81_v13  ;;  %1045 = vmatprep.subr.bf16.mxu0 %v1325_v9  ;;  %v83_v15 = vld [vmem:[#allocation3 + $0x80] sm:$0xff]  ;;  %v85_v17 = vld [vmem:[#allocation3 + $0x90] sm:$0xff]  ;;  %v1328_v19 = vcombine.low %v75_v7, %v79_v8 }
  0x2e   :  { %940 = vmatpush1.bf16.xpose.msra.mxu1 %v1320_v6  ;;  %1046 = vmatpush1.bf16.xpose.msra.mxu0 %v1324_v10  ;;  %v87_v16 = vld [vmem:[#allocation3 + $0xa0] sm:$0xff]  ;;  %v89_v18 = vld [vmem:[#allocation3 + $0xb0] sm:$0xff]  ;;  %v1332_v20 = vcombine.low %v77_v12, %v81_v13 }
  0x2f   :  { %941 = vmatprep.subr.bf16.mxu1 %v1329_v11  ;;  %1047 = vmatprep.subr.bf16.mxu0 %v1333_v14  ;;  %v1337_v21 = vcombine.high %v83_v15, %v87_v16  ;;  %v1341_v22 = vcombine.high %v85_v17, %v89_v18  ;;  %v91_v23 = vld [vmem:[#allocation3 + $0xc0] sm:$0xff]  ;;  %v93_v25 = vld [vmem:[#allocation3 + $0xd0] sm:$0xff]  ;;  %v1336_v27 = vcombine.low %v83_v15, %v87_v16 }
  0x30   :  { %v95_v24 = vld [vmem:[#allocation3 + $0xe0] sm:$0xff]  ;;  %v97_v26 = vld [vmem:[#allocation3 + $0xf0] sm:$0xff]  ;;  %v1340_v28 = vcombine.low %v85_v17, %v89_v18 }
  0x31   :  { %v1345_v29 = vcombine.high %v91_v23, %v95_v24  ;;  %v1349_v30 = vcombine.high %v93_v25, %v97_v26  ;;  %v1642_v31 = vld [vmem:[#allocation6] sm:$0xff]  ;;  %v1650_v37 = vld [vmem:[#allocation6 + $0x10] sm:$0xff]  ;;  %v1344_v41 = vcombine.low %v91_v23, %v95_v24  ;;  %v1348_v44 = vcombine.low %v93_v25, %v97_v26 }
  0x32   :  { %v1644_v32 = vld [vmem:[#allocation6 + $0x20] sm:$0xff]  ;;  %v101_v38 = vld [vmem:[#allocation3 + $0x110] sm:$0xff] }
  0x33   :  { %v99_v33 = vld [vmem:[#allocation3 + $0x100] sm:$0xff]  ;;  %v1304_v35 = vcombine.low %v1642_v31, %v1644_v32  ;;  %v1305_v36 = vcombine.high %v1642_v31, %v1644_v32  ;;  %v105_v39 = vld [vmem:[#allocation3 + $0x130] sm:$0xff] }
  0x34   :  { %v103_v34 = vld [vmem:[#allocation3 + $0x120] sm:$0xff]  ;;  %v1652_v40 = vld [vmem:[#allocation6 + $0x30] sm:$0xff]  ;;  %v1357_v46 = vcombine.high %v101_v38, %v105_v39  ;;  %v1356_v52 = vcombine.low %v101_v38, %v105_v39 }
  0x35   :  { %971 = vmatprep.mubr.bf16.mxu1 %v1305_v36  ;;  %v1308_v42 = vcombine.low %v1650_v37, %v1652_v40  ;;  %v1309_v43 = vcombine.high %v1650_v37, %v1652_v40  ;;  %v1353_v45 = vcombine.high %v99_v33, %v103_v34  ;;  %v107_v47 = vld [vmem:[#allocation3 + $0x140] sm:$0xff]  ;;  %v109_v49 = vld [vmem:[#allocation3 + $0x150] sm:$0xff]  ;;  %v1352_v51 = vcombine.low %v99_v33, %v103_v34 }
  0x36   :  { %942 = vmatpush1.bf16.xpose.msra.mxu1 %v1328_v19  ;;  %1048 = vmatpush1.bf16.xpose.msra.mxu0 %v1332_v20  ;;  %v111_v48 = vld [vmem:[#allocation3 + $0x160] sm:$0xff]  ;;  %v113_v50 = vld [vmem:[#allocation3 + $0x170] sm:$0xff] }
  0x37   :  { %943 = vmatprep.subr.bf16.mxu1 %v1337_v21  ;;  %1049 = vmatprep.subr.bf16.mxu0 %v1341_v22  ;;  %v1361_v53 = vcombine.high %v107_v47, %v111_v48  ;;  %v1365_v54 = vcombine.high %v109_v49, %v113_v50  ;;  %v115_v55 = vld [vmem:[#allocation3 + $0x180] sm:$0xff]  ;;  %v117_v57 = vld [vmem:[#allocation3 + $0x190] sm:$0xff]  ;;  %v1360_v59 = vcombine.low %v107_v47, %v111_v48 }
  0x38   :  { %1077 = vmatprep.mubr.bf16.mxu0 %v1309_v43  ;;  %v119_v56 = vld [vmem:[#allocation3 + $0x1a0] sm:$0xff]  ;;  %v121_v58 = vld [vmem:[#allocation3 + $0x1b0] sm:$0xff]  ;;  %v1364_v60 = vcombine.low %v109_v49, %v113_v50 }
  0x39   :  { %v1369_v61 = vcombine.high %v115_v55, %v119_v56  ;;  %v1373_v62 = vcombine.high %v117_v57, %v121_v58  ;;  %v123_v63 = vld [vmem:[#allocation3 + $0x1c0] sm:$0xff]  ;;  %v125_v1 = vld [vmem:[#allocation3 + $0x1d0] sm:$0xff]  ;;  %v1368_v3 = vcombine.low %v115_v55, %v119_v56  ;;  %v1372_v4 = vcombine.low %v117_v57, %v121_v58 }
  0x3a   :  { %v127_v0 = vld [vmem:[#allocation3 + $0x1e0] sm:$0xff]  ;;  %v129_v2 = vld [vmem:[#allocation3 + $0x1f0] sm:$0xff] }
  0x3b   :  { %v1377_v5 = vcombine.high %v123_v63, %v127_v0  ;;  %v1381_v6 = vcombine.high %v125_v1, %v129_v2  ;;  %v131_v7 = vld [vmem:[#allocation3 + $0x200] sm:$0xff]  ;;  %v133_v9 = vld [vmem:[#allocation3 + $0x210] sm:$0xff]  ;;  %v1376_v11 = vcombine.low %v123_v63, %v127_v0  ;;  %v1380_v12 = vcombine.low %v125_v1, %v129_v2 }
  0x3c   :  { %v135_v8 = vld [vmem:[#allocation3 + $0x220] sm:$0xff]  ;;  %v137_v10 = vld [vmem:[#allocation3 + $0x230] sm:$0xff] }
  0x3d   :  { %v1385_v13 = vcombine.high %v131_v7, %v135_v8  ;;  %v1389_v14 = vcombine.high %v133_v9, %v137_v10  ;;  %v139_v15 = vld [vmem:[#allocation3 + $0x240] sm:$0xff]  ;;  %v141_v17 = vld [vmem:[#allocation3 + $0x250] sm:$0xff]  ;;  %v1384_v19 = vcombine.low %v131_v7, %v135_v8  ;;  %v1388_v20 = vcombine.low %v133_v9, %v137_v10 }
  0x3e   :  { %944 = vmatpush1.bf16.xpose.msra.mxu1 %v1336_v27  ;;  %1050 = vmatpush1.bf16.xpose.msra.mxu0 %v1340_v28  ;;  %v143_v16 = vld [vmem:[#allocation3 + $0x260] sm:$0xff]  ;;  %v145_v18 = vld [vmem:[#allocation3 + $0x270] sm:$0xff] }
  0x3f   :  { %945 = vmatprep.subr.bf16.mxu1 %v1345_v29  ;;  %1051 = vmatprep.subr.bf16.mxu0 %v1349_v30  ;;  %v1393_v21 = vcombine.high %v139_v15, %v143_v16  ;;  %v1397_v22 = vcombine.high %v141_v17, %v145_v18  ;;  %v147_v23 = vld [vmem:[#allocation3 + $0x280] sm:$0xff]  ;;  %v149_v25 = vld [vmem:[#allocation3 + $0x290] sm:$0xff]  ;;  %v1392_v27 = vcombine.low %v139_v15, %v143_v16  ;;  %v70_v15 = vld [vmem:[#allocation3 + $0x18] sm:$0xff] }
  0x40   :  { %v151_v24 = vld [vmem:[#allocation3 + $0x2a0] sm:$0xff]  ;;  %v153_v26 = vld [vmem:[#allocation3 + $0x2b0] sm:$0xff]  ;;  %v1396_v28 = vcombine.low %v141_v17, %v145_v18  ;;  %v74_v16 = vld [vmem:[#allocation3 + $0x38] sm:$0xff] }
  0x41   :  { %v1401_v29 = vcombine.high %v147_v23, %v151_v24  ;;  %v1405_v30 = vcombine.high %v149_v25, %v153_v26  ;;  %v155_v33 = vld [vmem:[#allocation3 + $0x2c0] sm:$0xff]  ;;  %v157_v36 = vld [vmem:[#allocation3 + $0x2d0] sm:$0xff]  ;;  %v1400_v39 = vcombine.low %v147_v23, %v151_v24  ;;  %v1660_v23 = vld [vmem:[#allocation6 + $0x28] sm:$0xff] }
  0x42   :  { %v159_v34 = vld [vmem:[#allocation3 + $0x2e0] sm:$0xff]  ;;  %v161_v38 = vld [vmem:[#allocation3 + $0x2f0] sm:$0xff]  ;;  %v1662_v24 = vld [vmem:[#allocation6 + $0x18] sm:$0xff] }
  0x43   :  { %v1409_v43 = vcombine.high %v155_v33, %v159_v34  ;;  %v165_v47 = vld [vmem:[#allocation3 + $0x310] sm:$0xff]  ;;  %v1408_v49 = vcombine.low %v155_v33, %v159_v34  ;;  %v1412_v50 = vcombine.low %v157_v36, %v161_v38  ;;  %v63_v33 = vld [vmem:[#allocation6 + $0x60] sm:$0xff] }
  0x44   :  { %v169_v48 = vld [vmem:[#allocation3 + $0x330] sm:$0xff]  ;;  %v195_v40 = vld [vmem:[%s1724_s2] sm:$0xff] }
  0x45   :  { %v173_v55 = vld [vmem:[#allocation3 + $0x350] sm:$0xff]  ;;  %v1420_v58 = vcombine.low %v165_v47, %v169_v48 }
  0x46   :  { %946 = vmatpush1.bf16.xpose.msra.mxu1 %v1344_v41  ;;  %1052 = vmatpush1.bf16.xpose.msra.mxu0 %v1348_v44  ;;  %v1404_v41 = vcombine.low %v149_v25, %v153_v26  ;;  %v1413_v44 = vcombine.high %v157_v36, %v161_v38  ;;  %v177_v56 = vld [vmem:[#allocation3 + $0x370] sm:$0xff]  ;;  %v80_v25 = vld [vmem:[#allocation3 + $0x68] sm:$0xff]  ;;  %v78_v26 = vld [vmem:[#allocation3 + $0x58] sm:$0xff] }
  0x47   :  { %947 = vmatprep.subr.bf16.mxu1 %v1353_v45  ;;  %1053 = vmatprep.subr.bf16.mxu0 %v1357_v46  ;;  %v163_v45 = vld [vmem:[#allocation3 + $0x300] sm:$0xff]  ;;  %v181_v63 = vld [vmem:[#allocation3 + $0x390] sm:$0xff]  ;;  %v1428_v2 = vcombine.low %v173_v55, %v177_v56 }
  0x48   :  { %v167_v46 = vld [vmem:[#allocation3 + $0x320] sm:$0xff]  ;;  %v185_v0 = vld [vmem:[#allocation3 + $0x3b0] sm:$0xff] }
  0x49   :  { %v1416_v57 = vcombine.low %v163_v45, %v167_v46  ;;  %v189_v7 = vld [vmem:[#allocation3 + $0x3d0] sm:$0xff]  ;;  %v1436_v10 = vcombine.low %v181_v63, %v185_v0 }
  0x4a   :  { %v193_v8 = vld [vmem:[#allocation3 + $0x3f0] sm:$0xff] }
  0x4b   :  { %v1444_v18 = vcombine.low %v189_v7, %v193_v8  ;;  %v61_v38 = vld [vmem:[#allocation6 + $0x50] sm:$0xff] }
  0x4e   :  { %948 = vmatpush1.bf16.xpose.msra.mxu1 %v1352_v51  ;;  %1054 = vmatpush1.bf16.xpose.msra.mxu0 %v1356_v52  ;;  %v1417_v51 = vcombine.high %v163_v45, %v167_v46  ;;  %v1421_v52 = vcombine.high %v165_v47, %v169_v48  ;;  %v84_v47 = vld [vmem:[#allocation3 + $0x88] sm:$0xff] }
  0x4f   :  { %949 = vmatprep.subr.bf16.mxu1 %v1361_v53  ;;  %1055 = vmatprep.subr.bf16.mxu0 %v1365_v54  ;;  %v171_v53 = vld [vmem:[#allocation3 + $0x340] sm:$0xff]  ;;  %v88_v48 = vld [vmem:[#allocation3 + $0xa8] sm:$0xff] }
  0x50   :  { %v175_v54 = vld [vmem:[#allocation3 + $0x360] sm:$0xff]  ;;  %v1339_v32 = vcombine.high %v84_v47, %v88_v48 }
  0x51   :  { %v1424_v1 = vcombine.low %v171_v53, %v175_v54 }
  0x56   :  { %950 = vmatpush1.bf16.xpose.msra.mxu1 %v1360_v59  ;;  %1056 = vmatpush1.bf16.xpose.msra.mxu0 %v1364_v60  ;;  %v1425_v59 = vcombine.high %v171_v53, %v175_v54  ;;  %v1429_v60 = vcombine.high %v173_v55, %v177_v56  ;;  %v96_v55 = vld [vmem:[#allocation3 + $0xe8] sm:$0xff] }
  0x57   :  { %951 = vmatprep.subr.bf16.mxu1 %v1369_v61  ;;  %1057 = vmatprep.subr.bf16.mxu0 %v1373_v62  ;;  %v179_v61 = vld [vmem:[#allocation3 + $0x380] sm:$0xff]  ;;  %v197_v56 = vld [vmem:[%s1724_s2 + $0x10] sm:$0xff] }
  0x58   :  { %v183_v62 = vld [vmem:[#allocation3 + $0x3a0] sm:$0xff] }
  0x59   :  { %v1432_v9 = vcombine.low %v179_v61, %v183_v62 }
  0x5e   :  { %952 = vmatpush1.bf16.xpose.msra.mxu1 %v1368_v3  ;;  %1058 = vmatpush1.bf16.xpose.msra.mxu0 %v1372_v4  ;;  %v1433_v3 = vcombine.high %v179_v61, %v183_v62  ;;  %v1437_v4 = vcombine.high %v181_v63, %v185_v0  ;;  %v196_v63 = vld [vmem:[%s1724_s2 + $0x8] sm:$0xff] }
  0x5f   :  { %953 = vmatprep.subr.bf16.mxu1 %v1377_v5  ;;  %1059 = vmatprep.subr.bf16.mxu0 %v1381_v6  ;;  %v187_v5 = vld [vmem:[#allocation3 + $0x3c0] sm:$0xff] }
  0x60   :  { %v191_v6 = vld [vmem:[#allocation3 + $0x3e0] sm:$0xff] }
  0x61   :  { %v1440_v17 = vcombine.low %v187_v5, %v191_v6 }
  0x66   :  { %954 = vmatpush1.bf16.xpose.msra.mxu1 %v1376_v11  ;;  %1060 = vmatpush1.bf16.xpose.msra.mxu0 %v1380_v12  ;;  %v1441_v11 = vcombine.high %v187_v5, %v191_v6  ;;  %v1445_v12 = vcombine.high %v189_v7, %v193_v8  ;;  %v102_v5 = vld [vmem:[#allocation3 + $0x118] sm:$0xff]  ;;  %v1160_v7 = vld [vmem:[%s1725_s3 + $0x8] sm:$0xff] }
  0x67   :  { %955 = vmatprep.subr.bf16.mxu1 %v1385_v13  ;;  %1061 = vmatprep.subr.bf16.mxu0 %v1389_v14  ;;  %v68_v13 = vld [vmem:[#allocation3 + $0x8] sm:$0xff]  ;;  %v106_v6 = vld [vmem:[#allocation3 + $0x138] sm:$0xff] }
  0x68   :  { %v72_v14 = vld [vmem:[#allocation3 + $0x28] sm:$0xff] }
  0x69   :  { %v1322_v36 = vcombine.low %v68_v13, %v72_v14 }
  0x6e   :  { %956 = vmatpush1.bf16.xpose.msra.mxu1 %v1384_v19  ;;  %1062 = vmatpush1.bf16.xpose.msra.mxu0 %v1388_v20  ;;  %v1323_v19 = vcombine.high %v68_v13, %v72_v14  ;;  %v1327_v20 = vcombine.high %v70_v15, %v74_v16  ;;  %v1162_v13 = vld [vmem:[%s1725_s3 + $0x18] sm:$0xff]  ;;  %v1209_v14 = vld [vmem:[#allocation2] sm:$0x1] }
  0x6f   :  { %957 = vmatprep.subr.bf16.mxu1 %v1393_v21  ;;  %1063 = vmatprep.subr.bf16.mxu0 %v1397_v22  ;;  %v76_v21 = vld [vmem:[#allocation3 + $0x48] sm:$0xff] }
  0x70   :  { %v1658_v22 = vld [vmem:[#allocation6 + $0x8] sm:$0xff] }
  0x71   :  { %v1307_v54 = vcombine.high %v1658_v22, %v1660_v23 }
  0x76   :  { %958 = vmatpush1.bf16.xpose.msra.mxu1 %v1392_v27  ;;  %1064 = vmatpush1.bf16.xpose.msra.mxu0 %v1396_v28  ;;  %v1306_v27 = vcombine.low %v1658_v22, %v1660_v23  ;;  %v1666_v28 = vld [vmem:[#allocation6 + $0x38] sm:$0xff] }
  0x77   :  { %959 = vmatprep.subr.bf16.mxu1 %v1401_v29  ;;  %1065 = vmatprep.subr.bf16.mxu0 %v1405_v30  ;;  %v82_v29 = vld [vmem:[#allocation3 + $0x78] sm:$0xff]  ;;  %v59_v30 = vld [vmem:[#allocation6 + $0x40] sm:$0xff]  ;;  %v1310_v34 = vcombine.low %v1662_v24, %v1666_v28  ;;  %v1311_v37 = vcombine.high %v1662_v24, %v1666_v28 }
  0x78   :  { %v1313_v45 = vcombine.high %v59_v30, %v63_v33  ;;  %v1334_v31 = vcombine.low %v78_v26, %v82_v29 }
  0x7e   :  { %960 = vmatpush1.bf16.xpose.msra.mxu1 %v1400_v39  ;;  %1066 = vmatpush1.bf16.xpose.msra.mxu0 %v1404_v41  ;;  %v65_v39 = vld [vmem:[#allocation6 + $0x70] sm:$0xff]  ;;  %v1326_v41 = vcombine.low %v70_v15, %v74_v16  ;;  %v108_v15 = vld [vmem:[#allocation3 + $0x148] sm:$0xff] }
  0x7f   :  { %961 = vmatprep.subr.bf16.mxu1 %v1409_v43  ;;  %1067 = vmatprep.subr.bf16.mxu0 %v1413_v44  ;;  %v1331_v43 = vcombine.high %v76_v21, %v80_v25  ;;  %v1335_v44 = vcombine.high %v78_v26, %v82_v29  ;;  %v1317_v46 = vcombine.high %v61_v38, %v65_v39  ;;  %v112_v16 = vld [vmem:[#allocation3 + $0x168] sm:$0xff] }
  0x80   :  { %v1316_v53 = vcombine.low %v61_v38, %v65_v39  ;;  %v116_v26 = vld [vmem:[#allocation3 + $0x188] sm:$0xff] }
  0x81   :  { %v120_v29 = vld [vmem:[#allocation3 + $0x1a8] sm:$0xff] }
  0x82   :  { %v1371_v39 = vcombine.high %v116_v26, %v120_v29 }
  0x86   :  { %962 = vmatpush1.bf16.xpose.msra.mxu1 %v1408_v49  ;;  %1068 = vmatpush1.bf16.xpose.msra.mxu0 %v1412_v50  ;;  %v86_v49 = vld [vmem:[#allocation3 + $0x98] sm:$0xff] }
  0x87   :  { %963 = vmatprep.subr.bf16.mxu1 %v1417_v51  ;;  %1069 = vmatprep.subr.bf16.mxu0 %v1421_v52  ;;  %v90_v50 = vld [vmem:[#allocation3 + $0xb8] sm:$0xff]  ;;  %v1312_v51 = vcombine.low %v59_v30, %v63_v33  ;;  %v1330_v52 = vcombine.low %v76_v21, %v80_v25  ;;  %v1363_v21 = vcombine.high %v108_v15, %v112_v16 }
  0x88   :  { %v1342_v61 = vcombine.low %v86_v49, %v90_v50  ;;  %v118_v30 = vld [vmem:[#allocation3 + $0x198] sm:$0xff] }
  0x89   :  { %v122_v33 = vld [vmem:[#allocation3 + $0x1b8] sm:$0xff] }
  0x8e   :  { %964 = vmatpush1.bf16.xpose.msra.mxu1 %v1416_v57  ;;  %1070 = vmatpush1.bf16.xpose.msra.mxu0 %v1420_v58  ;;  %v94_v57 = vld [vmem:[#allocation3 + $0xd8] sm:$0xff] }
  0x8f   :  { %965 = vmatprep.subr.bf16.mxu1 %v1425_v59  ;;  %1071 = vmatprep.subr.bf16.mxu0 %v1429_v60  ;;  %v98_v58 = vld [vmem:[#allocation3 + $0xf8] sm:$0xff]  ;;  %v1583_v59 = vmov 0   ;;  %v1338_v60 = vcombine.low %v84_v47, %v88_v48  ;;  %v1370_v47 = vcombine.low %v116_v26, %v120_v29  ;;  %v1374_v48 = vcombine.low %v118_v30, %v122_v33 }
  0x90   :  { %1489 = vset.pattern.permute.xlu0 %v1583_v59  ;;  %1490 = vset.pattern.permute.xlu1 %v1583_v59  ;;  %v1351_v0 = vcombine.high %v94_v57, %v98_v58  ;;  %v174_v26 = vld [vmem:[#allocation3 + $0x358] sm:$0xff] }
  0x91   :  { %201 = vperm.xlu0 %1489, %v195_v40   ;;  %211 = vperm.xlu1 %1490, %v197_v56   ;;  %v140_v40 = vld [vmem:[#allocation3 + $0x248] sm:$0xff]  ;;  %v146_v56 = vld [vmem:[#allocation3 + $0x278] sm:$0xff] }
  0x92   :  { %v178_v29 = vld [vmem:[#allocation3 + $0x378] sm:$0xff] }
  0x95   :  { %206 = vperm.xlu0 %1489, %v196_v63   ;;  %v150_v63 = vld [vmem:[#allocation3 + $0x298] sm:$0xff] }
  0x96   :  { %966 = vmatpush1.bf16.xpose.msra.mxu1 %v1424_v1  ;;  %1072 = vmatpush1.bf16.xpose.msra.mxu0 %v1428_v2  ;;  %v198_v1 = vld [vmem:[%s1724_s2 + $0x18] sm:$0xff]  ;;  %v1159_v2 = vld [vmem:[%s1725_s3] sm:$0xff] }
  0x97   :  { %967 = vmatprep.subr.bf16.mxu1 %v1433_v3  ;;  %1073 = vmatprep.subr.bf16.mxu0 %v1437_v4  ;;  %v100_v3 = vld [vmem:[#allocation3 + $0x108] sm:$0xff] }
  0x98   :  { %v104_v4 = vld [vmem:[#allocation3 + $0x128] sm:$0xff]  ;;  %216 = vperm.xlu1 %1490, %v198_v1  }
  0x99   :  { %1165 = vperm.xlu0 %1489, %v1159_v2  }
  0x9c   :  { %1170 = vperm.xlu1 %1490, %v1160_v7   ;;  %v158_v7 = vld [vmem:[#allocation3 + $0x2d8] sm:$0xff] }
  0x9e   :  { %968 = vmatpush1.bf16.xpose.msra.mxu1 %v1432_v9  ;;  %1074 = vmatpush1.bf16.xpose.msra.mxu0 %v1436_v10  ;;  %v1350_v9 = vcombine.low %v94_v57, %v98_v58  ;;  %v1355_v10 = vcombine.high %v100_v3, %v104_v4 }
  0x9f   :  { %969 = vmatprep.subr.bf16.mxu1 %v1441_v11  ;;  %1075 = vmatprep.subr.bf16.mxu0 %v1445_v12  ;;  %v1161_v11 = vld [vmem:[%s1725_s3 + $0x10] sm:$0xff]  ;;  %v1359_v12 = vcombine.high %v102_v5, %v106_v6  ;;  %s1584_s3 = smov [#allocation8]  }
  0xa0   :  { %1175 = vperm.xlu0 %1489, %v1161_v11   ;;  %1180 = vperm.xlu1 %1490, %v1162_v13   ;;  %v164_v13 = vld [vmem:[#allocation3 + $0x308] sm:$0xff]  ;;  %s1294_s7 = sshll.u32 %s1584_s3, 4  ;;  %s1295_s7 = int_to_ptr.vmem [resolvable:$true] %s1294_s7 }
  0xa1   :  { %s1551_s8 = scalar_lea.vmem %s1295_s7, 64  ;;  %p1556_p3 = scmp.lt.s32.totalorder %s1295_s7, %s1295_s7 }
  0xa2   :  { %p1552_p2 = scmp.ne.s32.totalorder %s1295_s7, %s1551_s8  ;;  %p1557_p4 = scmp.lt.s32.totalorder %s1551_s8, %s1551_s8 }
  0xa4   :  { %1212 = vperm.xlu0 %1489, %v1209_v14   ;;  %v168_v14 = vld [vmem:[#allocation3 + $0x328] sm:$0xff]  ;;  %p1558_p5 = por %p1557_p4, %p1556_p3 }
  0xa6   :  { %970 = vmatpush1.bf16.xpose.msra.mxu1 %v1440_v17  ;;  %1076 = vmatpush1.bf16.xpose.msra.mxu0 %v1444_v18  ;;  %v110_v17 = vld [vmem:[#allocation3 + $0x158] sm:$0xff]  ;;  %p1559_p6 = pnand %p1558_p5, %p1552_p2 }
  0xa7   :  { %992 = vmatprep.subr.bf16.mxu1 %v1323_v19  ;;  %1098 = vmatprep.subr.bf16.mxu0 %v1327_v20  ;;  %v114_v18 = vld [vmem:[#allocation3 + $0x178] sm:$0xff]  ;;  %v1354_v19 = vcombine.low %v100_v3, %v104_v4  ;;  %v1358_v20 = vcombine.low %v102_v5, %v106_v6  ;;  %v156_v5 = vld [vmem:[#allocation3 + $0x2c8] sm:$0xff] }
  0xa8   :  { %v1367_v25 = vcombine.high %v110_v17, %v114_v18  ;;  %v1366_v38 = vcombine.low %v110_v17, %v114_v18  ;;  %v160_v6 = vld [vmem:[#allocation3 + $0x2e8] sm:$0xff] }
  0xa9   :  { %v1411_v11 = vcombine.high %v156_v5, %v160_v6  ;;  %v1410_v17 = vcombine.low %v156_v5, %v160_v6 }
  0xad   :  { %972 = vmatmul.mubr.bf16.vlgmr.msra.gmra.mrb[0].mxu1 %v1304_v35  ;;  %1078 = vmatmul.mubr.bf16.vlgmr.msra.gmra.mrb[0].mxu0 %v1308_v42  ;;  %v1343_v35 = vcombine.high %v86_v49, %v90_v50  ;;  %v92_v42 = vld [vmem:[#allocation3 + $0xc8] sm:$0xff] }
  0xae   :  { %993 = vmatpush1.bf16.xpose.msra.mxu1 %v1322_v36  ;;  %1099 = vmatpush1.bf16.xpose.msra.mxu0 %v1326_v41  ;;  %v1347_v62 = vcombine.high %v92_v42, %v96_v55  ;;  %v1346_v8 = vcombine.low %v92_v42, %v96_v55  ;;  %v1362_v36 = vcombine.low %v108_v15, %v112_v16  ;;  %v144_v42 = vld [vmem:[#allocation3 + $0x268] sm:$0xff]  ;;  %v142_v55 = vld [vmem:[#allocation3 + $0x258] sm:$0xff] }
  0xaf   :  { %994 = vmatprep.subr.bf16.mxu1 %v1331_v43  ;;  %1100 = vmatprep.subr.bf16.mxu0 %v1335_v44  ;;  %v1375_v41 = vcombine.high %v118_v30, %v122_v33  ;;  %v124_v43 = vld [vmem:[#allocation3 + $0x1c8] sm:$0xff]  ;;  %v1395_v59 = vcombine.high %v140_v40, %v144_v42  ;;  %v1394_v1 = vcombine.low %v140_v40, %v144_v42  ;;  %v166_v15 = vld [vmem:[#allocation3 + $0x318] sm:$0xff] }
  0xb0   :  { %981 = vmatprep.mubr.bf16.mxu1 %v1313_v45  ;;  %1087 = vmatprep.mubr.bf16.mxu0 %v1317_v46  ;;  %v128_v44 = vld [vmem:[#allocation3 + $0x1e8] sm:$0xff]  ;;  %v126_v45 = vld [vmem:[#allocation3 + $0x1d8] sm:$0xff]  ;;  %v1398_v2 = vcombine.low %v142_v55, %v146_v56  ;;  %v1418_v30 = vcombine.low %v164_v13, %v168_v14 }
  0xb1   :  { %v130_v46 = vld [vmem:[#allocation3 + $0x1f8] sm:$0xff]  ;;  %v1379_v49 = vcombine.high %v124_v43, %v128_v44  ;;  %v60_v40 = vld [vmem:[#allocation6 + $0x48] sm:$0xff] }
  0xb2   :  { %v1383_v50 = vcombine.high %v126_v45, %v130_v46  ;;  %v170_v16 = vld [vmem:[#allocation3 + $0x338] sm:$0xff]  ;;  %v64_v42 = vld [vmem:[#allocation6 + $0x68] sm:$0xff] }
  0xb3   :  { %v1422_v33 = vcombine.low %v166_v15, %v170_v16 }
  0xb5   :  { %982 = vmatmul.mubr.bf16.gmra.mrb[4].mxu1 %v1312_v51  ;;  %1088 = vmatmul.mubr.bf16.gmra.mrb[4].mxu0 %v1316_v53  ;;  %v132_v51 = vld [vmem:[#allocation3 + $0x208] sm:$0xff]  ;;  %v134_v53 = vld [vmem:[#allocation3 + $0x218] sm:$0xff] }
  0xb6   :  { %995 = vmatpush1.bf16.xpose.msra.mxu1 %v1330_v52  ;;  %1101 = vmatpush1.bf16.xpose.msra.mxu0 %v1334_v31  ;;  %v136_v52 = vld [vmem:[#allocation3 + $0x228] sm:$0xff]  ;;  %v138_v31 = vld [vmem:[#allocation3 + $0x238] sm:$0xff] }
  0xb7   :  { %996 = vmatprep.subr.bf16.mxu1 %v1339_v32  ;;  %1102 = vmatprep.subr.bf16.mxu0 %v1343_v35  ;;  %v1378_v32 = vcombine.low %v124_v43, %v128_v44  ;;  %v1382_v35 = vcombine.low %v126_v45, %v130_v46  ;;  %v1386_v57 = vcombine.low %v132_v51, %v136_v52  ;;  %v182_v43 = vld [vmem:[#allocation3 + $0x398] sm:$0xff] }
  0xb8   :  { %1024 = vmatprep.mubr.bf16.mxu1 %v1307_v54  ;;  %1130 = vmatprep.mubr.bf16.mxu0 %v1311_v37  ;;  %v1387_v54 = vcombine.high %v132_v51, %v136_v52  ;;  %v1391_v37 = vcombine.high %v134_v53, %v138_v31  ;;  %v1390_v58 = vcombine.low %v134_v53, %v138_v31  ;;  %v186_v44 = vld [vmem:[#allocation3 + $0x3b8] sm:$0xff] }
  0xb9   :  { %v1430_v46 = vcombine.low %v174_v26, %v178_v29  ;;  %v190_v51 = vld [vmem:[#allocation3 + $0x3d8] sm:$0xff]  ;;  %v1438_v31 = vcombine.low %v182_v43, %v186_v44 }
  0xba   :  { %v194_v52 = vld [vmem:[#allocation3 + $0x3f8] sm:$0xff] }
  0xbe   :  { %997 = vmatpush1.bf16.xpose.msra.mxu1 %v1338_v60  ;;  %1103 = vmatpush1.bf16.xpose.msra.mxu0 %v1342_v61  ;;  %v1399_v60 = vcombine.high %v142_v55, %v146_v56  ;;  %v148_v61 = vld [vmem:[#allocation3 + $0x288] sm:$0xff]  ;;  %v62_v55 = vld [vmem:[#allocation6 + $0x58] sm:$0xff] }
  0xbf   :  { %998 = vmatprep.subr.bf16.mxu1 %v1347_v62  ;;  %1104 = vmatprep.subr.bf16.mxu0 %v1351_v0  ;;  %v152_v62 = vld [vmem:[#allocation3 + $0x2a8] sm:$0xff]  ;;  %v154_v0 = vld [vmem:[#allocation3 + $0x2b8] sm:$0xff] }
  0xc0   :  { %v1403_v3 = vcombine.high %v148_v61, %v152_v62  ;;  %v1407_v4 = vcombine.high %v150_v63, %v154_v0  ;;  %v66_v56 = vld [vmem:[#allocation6 + $0x78] sm:$0xff] }
  0xc6   :  { %999 = vmatpush1.bf16.xpose.msra.mxu1 %v1346_v8  ;;  %1105 = vmatpush1.bf16.xpose.msra.mxu0 %v1350_v9  ;;  %v162_v8 = vld [vmem:[#allocation3 + $0x2f8] sm:$0xff]  ;;  %v1402_v9 = vcombine.low %v148_v61, %v152_v62 }
  0xc7   :  { %1000 = vmatprep.subr.bf16.mxu1 %v1355_v10  ;;  %1106 = vmatprep.subr.bf16.mxu0 %v1359_v12  ;;  %v1406_v10 = vcombine.low %v150_v63, %v154_v0  ;;  %v1415_v12 = vcombine.high %v158_v7, %v162_v8  ;;  %v1414_v18 = vcombine.low %v158_v7, %v162_v8 }
  0xce   :  { %1001 = vmatpush1.bf16.xpose.msra.mxu1 %v1354_v19  ;;  %1107 = vmatpush1.bf16.xpose.msra.mxu0 %v1358_v20  ;;  %v1419_v19 = vcombine.high %v164_v13, %v168_v14  ;;  %v1423_v20 = vcombine.high %v166_v15, %v170_v16 }
  0xcf   :  { %1002 = vmatprep.subr.bf16.mxu1 %v1363_v21  ;;  %1108 = vmatprep.subr.bf16.mxu0 %v1367_v25  ;;  %v172_v21 = vld [vmem:[#allocation3 + $0x348] sm:$0xff] }
  0xd0   :  { %v176_v25 = vld [vmem:[#allocation3 + $0x368] sm:$0xff] }
  0xd1   :  { %v1426_v45 = vcombine.low %v172_v21, %v176_v25 }
  0xd6   :  { %1003 = vmatpush1.bf16.xpose.msra.mxu1 %v1362_v36  ;;  %1109 = vmatpush1.bf16.xpose.msra.mxu0 %v1366_v38  ;;  %v1427_v36 = vcombine.high %v172_v21, %v176_v25  ;;  %v1431_v38 = vcombine.high %v174_v26, %v178_v29 }
  0xd7   :  { %1004 = vmatprep.subr.bf16.mxu1 %v1371_v39  ;;  %1110 = vmatprep.subr.bf16.mxu0 %v1375_v41  ;;  %v180_v39 = vld [vmem:[#allocation3 + $0x388] sm:$0xff] }
  0xd8   :  { %v184_v41 = vld [vmem:[#allocation3 + $0x3a8] sm:$0xff] }
  0xd9   :  { %v1434_v53 = vcombine.low %v180_v39, %v184_v41 }
  0xde   :  { %1005 = vmatpush1.bf16.xpose.msra.mxu1 %v1370_v47  ;;  %1111 = vmatpush1.bf16.xpose.msra.mxu0 %v1374_v48  ;;  %v1435_v47 = vcombine.high %v180_v39, %v184_v41  ;;  %v1439_v48 = vcombine.high %v182_v43, %v186_v44 }
  0xdf   :  { %1006 = vmatprep.subr.bf16.mxu1 %v1379_v49  ;;  %1112 = vmatprep.subr.bf16.mxu0 %v1383_v50  ;;  %v188_v49 = vld [vmem:[#allocation3 + $0x3c8] sm:$0xff] }
  0xe0   :  { %v192_v50 = vld [vmem:[#allocation3 + $0x3e8] sm:$0xff] }
  0xe6   :  { %1007 = vmatpush1.bf16.xpose.msra.mxu1 %v1378_v32  ;;  %1113 = vmatpush1.bf16.xpose.msra.mxu0 %v1382_v35  ;;  %v1443_v32 = vcombine.high %v188_v49, %v192_v50  ;;  %v1447_v35 = vcombine.high %v190_v51, %v194_v52 }
  0xe7   :  { %1008 = vmatprep.subr.bf16.mxu1 %v1387_v54  ;;  %1114 = vmatprep.subr.bf16.mxu0 %v1391_v37  ;;  %v1442_v54 = vcombine.low %v188_v49, %v192_v50  ;;  %v1446_v37 = vcombine.low %v190_v51, %v194_v52 }
  0xee   :  { %1009 = vmatpush1.bf16.xpose.msra.mxu1 %v1386_v57  ;;  %1115 = vmatpush1.bf16.xpose.msra.mxu0 %v1390_v58  ;;  %v1315_v57 = vcombine.high %v60_v40, %v64_v42  ;;  %v1319_v58 = vcombine.high %v62_v55, %v66_v56 }
  0xef   :  { %1010 = vmatprep.subr.bf16.mxu1 %v1395_v59  ;;  %1116 = vmatprep.subr.bf16.mxu0 %v1399_v60  ;;  %v1314_v59 = vcombine.low %v60_v40, %v64_v42  ;;  %v1318_v60 = vcombine.low %v62_v55, %v66_v56 }
  0xf6   :  { %1011 = vmatpush1.bf16.xpose.msra.mxu1 %v1394_v1  ;;  %1117 = vmatpush1.bf16.xpose.msra.mxu0 %v1398_v2 }
  0xf7   :  { %1012 = vmatprep.subr.bf16.mxu1 %v1403_v3  ;;  %1118 = vmatprep.subr.bf16.mxu0 %v1407_v4 }
  0xfe   :  { %1013 = vmatpush1.bf16.xpose.msra.mxu1 %v1402_v9  ;;  %1119 = vmatpush1.bf16.xpose.msra.mxu0 %v1406_v10 }
  0xff   :  { %1014 = vmatprep.subr.bf16.mxu1 %v1411_v11  ;;  %1120 = vmatprep.subr.bf16.mxu0 %v1415_v12 }
 0x106   :  { %1015 = vmatpush1.bf16.xpose.msra.mxu1 %v1410_v17  ;;  %1121 = vmatpush1.bf16.xpose.msra.mxu0 %v1414_v18 }
 0x107   :  { %1016 = vmatprep.subr.bf16.mxu1 %v1419_v19  ;;  %1122 = vmatprep.subr.bf16.mxu0 %v1423_v20 }
 0x10e   :  { %1017 = vmatpush1.bf16.xpose.msra.mxu1 %v1418_v30  ;;  %1123 = vmatpush1.bf16.xpose.msra.mxu0 %v1422_v33 }
 0x10f   :  { %1018 = vmatprep.subr.bf16.mxu1 %v1427_v36  ;;  %1124 = vmatprep.subr.bf16.mxu0 %v1431_v38 }
 0x110   :  { %v202_v61 = vpop.permute.xlu0 %201  ;;  %v212_v62 = vpop.permute.xlu1 %211 }
 0x114   :  { %v207_v63 = vpop.permute.xlu0 %206 }
 0x116   :  { %1019 = vmatpush1.bf16.xpose.msra.mxu1 %v1426_v45  ;;  %1125 = vmatpush1.bf16.xpose.msra.mxu0 %v1430_v46 }
 0x117   :  { %1020 = vmatprep.subr.bf16.mxu1 %v1435_v47  ;;  %1126 = vmatprep.subr.bf16.mxu0 %v1439_v48  ;;  %v217_v0 = vpop.permute.xlu1 %216 }
 0x118   :  { %v1166_v13 = vpop.permute.xlu0 %1165 }
 0x11b   :  { %v1171_v15 = vpop.permute.xlu1 %1170 }
 0x11e   :  { %1021 = vmatpush1.bf16.xpose.msra.mxu1 %v1434_v53  ;;  %1127 = vmatpush1.bf16.xpose.msra.mxu0 %v1438_v31 }
 0x11f   :  { %1022 = vmatprep.subr.bf16.mxu1 %v1443_v32  ;;  %1128 = vmatprep.subr.bf16.mxu0 %v1447_v35  ;;  %v1176_v51 = vpop.permute.xlu0 %1175  ;;  %v1181_v35 = vpop.permute.xlu1 %1180 }
 0x126   :  { %1023 = vmatpush1.bf16.xpose.msra.mxu1 %v1442_v54  ;;  %1129 = vmatpush1.bf16.xpose.msra.mxu0 %v1446_v37 }
 0x12d   :  { %1025 = vmatmul.mubr.bf16.vlgmr.msra.gmra.mrb[0].mxu1 %v1306_v27  ;;  %1131 = vmatmul.mubr.bf16.vlgmr.msra.gmra.mrb[0].mxu0 %v1310_v34 }
 0x12e   :  { %1034 = vmatprep.mubr.bf16.mxu1 %v1315_v57  ;;  %1140 = vmatprep.mubr.bf16.mxu0 %v1319_v58  ;;  %v1215_v57 = vlaneseq }
 0x135   :  { %1035 = vmatmul.mubr.bf16.gmra.mrb[4].mxu1 %v1314_v59  ;;  %1141 = vmatmul.mubr.bf16.gmra.mrb[4].mxu0 %v1318_v60 }
 0x200   :  { %v1026_v1 = vpop.f32.mrb[0].mxu1  ;;  %v1132_v3 = vpop.f32.mrb[0].mxu0 }
 0x201   :  { %v1451_v2 = vadd.f32 %v1026_v1, %v202_v61  ;;  %v1028_v4 = vpop.f32.mrb[1].mxu1  ;;  %v1134_v23 = vpop.f32.mrb[1].mxu0 }
 0x202   :  { %v1453_v22 = vadd.f32 %v1028_v4, %v202_v61  ;;  %v1030_v27 = vpop.f32.mrb[2].mxu1  ;;  %v1136_v28 = vpop.f32.mrb[2].mxu0 }
 0x203   :  { %v1452_v5 = vadd.f32 %v1451_v2, %v1132_v3  ;;  %v1455_v24 = vadd.f32 %v1030_v27, %v207_v63  ;;  %v1032_v34 = vpop.f32.mrb[3].mxu1  ;;  %v1138_v8 = vpop.f32.mrb[3].mxu0 }
 0x204   :  { %v1454_v6 = vadd.f32 %v1453_v22, %v1134_v23  ;;  %v1457_v7 = vadd.f32 %v1032_v34, %v207_v63  ;;  %v1213_v22 = vpop.permute.xlu0 %1212 }
 0x205   :  { %v1151_v9 = vmax.f32 %v1452_v5, 0.0  ;;  %v1456_v10 = vadd.f32 %v1455_v24, %v1136_v28 }
 0x206   :  { %v1152_v11 = vmax.f32 %v1454_v6, 0.0  ;;  %v1458_v12 = vadd.f32 %v1457_v7, %v1138_v8 }
 0x207   :  { %v1153_v14 = vmax.f32 %v1456_v10, 0.0  ;;  %v1183_v18 = vmul.f32 %v1166_v13, %v1151_v9 }
 0x208   :  { %v1154_v16 = vmax.f32 %v1458_v12, 0.0  ;;  %v1036_v17 = vpop.f32.mrb[4].mxu1  ;;  %v1142_v21 = vpop.f32.mrb[4].mxu0  ;;  %v1184_v26 = vmul.f32 %v1166_v13, %v1152_v11 }
 0x209   :  { %v1185_v19 = vmul.f32 %v1171_v15, %v1153_v14  ;;  %v1459_v20 = vadd.f32 %v1036_v17, %v212_v62  ;;  %v1038_v25 = vpop.f32.mrb[5].mxu1  ;;  %v1144_v33 = vpop.f32.mrb[5].mxu0 }
 0x20a   :  { %v1186_v29 = vmul.f32 %v1171_v15, %v1154_v16  ;;  %v1461_v30 = vadd.f32 %v1038_v25, %v212_v62  ;;  %v1040_v36 = vpop.f32.mrb[6].mxu1  ;;  %v1146_v43 = vpop.f32.mrb[6].mxu0  ;;  %v1216_v62 = vshrl.u32 %v1215_v57, 7 }
 0x20b   :  { %v1191_v38 = vadd.f32 %v1185_v19, %v1183_v18  ;;  %v1460_v39 = vadd.f32 %v1459_v20, %v1142_v21  ;;  %v1463_v41 = vadd.f32 %v1040_v36, %v217_v0  ;;  %v1042_v44 = vpop.f32.mrb[7].mxu1  ;;  %v1148_v48 = vpop.f32.mrb[7].mxu0 }
 0x20c   :  { %v1200_v45 = vadd.f32 %v1186_v29, %v1184_v26  ;;  %v1462_v46 = vadd.f32 %v1461_v30, %v1144_v33  ;;  %v1465_v47 = vadd.f32 %v1042_v44, %v217_v0  ;;  %v1217_v3 = vsub.s32 0, %v1216_v62 }
 0x20d   :  { %v1155_v49 = vmax.f32 %v1460_v39, 0.0  ;;  %v1464_v50 = vadd.f32 %v1463_v41, %v1146_v43 }
 0x20e   :  { %v1156_v52 = vmax.f32 %v1462_v46, 0.0  ;;  %v1466_v53 = vadd.f32 %v1465_v47, %v1148_v48  ;;  %v1218_v24 = vrot.slane %v1213_v22, %v1217_v3 }
 0x20f   :  { %v1187_v31 = vmul.f32 %v1176_v51, %v1155_v49  ;;  %v1157_v32 = vmax.f32 %v1464_v50, 0.0 }
 0x210   :  { %v1188_v54 = vmul.f32 %v1176_v51, %v1156_v52  ;;  %v1158_v37 = vmax.f32 %v1466_v53, 0.0 }
 0x211   :  { %v1192_v40 = vadd.f32 %v1191_v38, %v1187_v31  ;;  %v1189_v42 = vmul.f32 %v1181_v35, %v1157_v32 }
 0x212   :  { %v1201_v55 = vadd.f32 %v1200_v45, %v1188_v54  ;;  %v1190_v56 = vmul.f32 %v1181_v35, %v1158_v37 }
 0x213   :  { %v1193_v58 = vadd.f32 %v1192_v40, %v1189_v42 }
 0x214   :  { %v1202_v59 = vadd.f32 %v1201_v55, %v1190_v56 }
 0x215   :  { %v1194_v60 = vrot.slane %v1193_v58, 4 }
 0x216   :  { %v1203_v61 = vrot.slane %v1202_v59, 4 }
 0x217   :  { %v1195_v63 = vadd.f32 %v1194_v60, %v1193_v58 }
 0x218   :  { %v1204_v0 = vadd.f32 %v1203_v61, %v1202_v59 }
 0x219   :  { %v1196_v1 = vrot.slane %v1195_v63, 2 }
 0x21a   :  { %v1205_v2 = vrot.slane %v1204_v0, 2 }
 0x21b   :  { %v1197_v4 = vadd.f32 %v1196_v1, %v1195_v63 }
 0x21c   :  { %v1206_v23 = vadd.f32 %v1205_v2, %v1204_v0 }
 0x21d   :  { %v1198_v27 = vrot.slane %v1197_v4, 1 }
 0x21e   :  { %v1207_v5 = vrot.slane %v1206_v23, 1 }
 0x21f   :  { %v1199_v28 = vadd.f32 %v1198_v27, %v1197_v4 }
 0x220   :  { %v1208_v34 = vadd.f32 %v1207_v5, %v1206_v23 }
 0x221   :  { %v1219_v6 = vadd.f32 %v1218_v24, %v1199_v28 }
 0x222   :  { %v1220_v7 = vadd.f32 %v1218_v24, %v1208_v34 }
 0x223   :  { %v1227_v8 = vand.u32 2147483647, %v1219_v6  ;;  %v1448_v9 = vmul.f32 -1.442695, %v1219_v6  ;;  %v1221_v47 = vmax.f32 %v1219_v6, 0.0  ;;  %vm1223_vm2 = vcmp.ne.f32.partialorder %v1219_v6, %v1219_v6 }
 0x224   :  { %v1228_v10 = vand.u32 2147483647, %v1220_v7  ;;  %v1449_v11 = vmul.f32 -1.442695, %v1220_v7  ;;  %v1222_v51 = vmax.f32 %v1220_v7, 0.0  ;;  %vm1224_vm3 = vcmp.ne.f32.partialorder %v1220_v7, %v1220_v7 }
 0x225   :  { %v1229_v12 = vsub.f32 0.0, %v1227_v8  ;;  %1491 = vpow2.f32 %v1448_v9 }
 0x226   :  { %v1230_v13 = vsub.f32 0.0, %v1228_v10  ;;  %1493 = vpow2.f32 %v1449_v11 }
 0x227   :  { %v1231_v14 = vmul.f32 1.442695, %v1229_v12 }
 0x228   :  { %v1233_v15 = vmul.f32 1.442695, %v1230_v13 }
 0x229   :  { %1495 = vpow2.f32 %v1231_v14 }
 0x22a   :  { %1497 = vpow2.f32 %v1233_v15 }
 0x22f   :  { %v1492_v16 = vpop.eup %1491 }
 0x230   :  { %v1494_v17 = vpop.eup %1493  ;;  %v1263_v21 = vadd.f32 1.0, %v1492_v16 }
 0x231   :  { %v1264_v26 = vadd.f32 1.0, %v1494_v17 }
 0x233   :  { %v1496_v18 = vpop.eup %1495 }
 0x234   :  { %v1498_v19 = vpop.eup %1497  ;;  %v1235_v20 = vadd.f32 1.0, %v1496_v18  ;;  %v1238_v29 = vmul.f32 -0.5, %v1496_v18  ;;  %v1241_v36 = vand.u32 2147483647, %v1496_v18 }
 0x235   :  { %v1244_v25 = vadd.f32 1.0, %v1498_v19  ;;  %v1247_v30 = vmul.f32 -0.5, %v1498_v19  ;;  %v1250_v39 = vand.u32 2147483647, %v1498_v19 }
 0x236   :  { %1499 = vlog2.f32 %v1235_v20  ;;  %v1239_v33 = vadd.f32 1.0, %v1238_v29  ;;  %vm1242_vm0 = vcmp.lt.f32.partialorder %v1241_v36, 0.0004427343 }
 0x237   :  { %1501 = vlog2.f32 %v1244_v25  ;;  %v1248_v38 = vadd.f32 1.0, %v1247_v30  ;;  %vm1251_vm1 = vcmp.lt.f32.partialorder %v1250_v39, 0.0004427343 }
 0x238   :  { %1503 = vrcp.f32 %v1263_v21  ;;  %v1240_v45 = vmul.f32 %v1496_v18, %v1239_v33 }
 0x239   :  { %1505 = vrcp.f32 %v1264_v26  ;;  %v1249_v49 = vmul.f32 %v1498_v19, %v1248_v38 }
 0x240   :  { %v1500_v41 = vpop.eup %1499 }
 0x241   :  { %v1502_v43 = vpop.eup %1501  ;;  %v1237_v44 = vmul.f32 0.6931472, %v1500_v41 }
 0x242   :  { %v1504_v46 = vpop.eup %1503  ;;  %v1246_v48 = vmul.f32 0.6931472, %v1502_v43 }
 0x243   :  { %v1506_v50 = vpop.eup %1505  ;;  %v1243_v52 = vsel %vm1242_vm0, %v1240_v45, %v1237_v44  ;;  %v1269_v35 = vmul.f32 %v1504_v46, %v1219_v6 }
 0x244   :  { %v1252_v53 = vsel %vm1251_vm1, %v1249_v49, %v1246_v48  ;;  %v1253_v31 = vadd.f32 %v1243_v52, %v1221_v47  ;;  %v1270_v37 = vmul.f32 %v1506_v50, %v1220_v7 }
 0x245   :  { %v1254_v32 = vadd.f32 %v1252_v53, %v1222_v51 }
 0x246   :  { %v1255_v54 = vsel %vm1223_vm2, %v1219_v6, %v1253_v31 }
 0x247   :  { %v1256_v40 = vsel %vm1224_vm3, %v1220_v7, %v1254_v32  ;;  %v1271_v42 = vsub.f32 %v1255_v54, %v1269_v35 }
 0x248   :  { %v1272_v55 = vsub.f32 %v1256_v40, %v1270_v37 }
 0x249   :  { %v1274_v56 = vsel %vm1273_vm4, %v1219_v6, %v1271_v42 }
 0x24a   :  { %v1275_v57 = vsel %vm1273_vm4, %v1220_v7, %v1272_v55 }
 0x24b   :  { %v1278_v58 = vcombine.low %v1274_v56, %v1275_v57 }
 0x24d   :  { %1450 = vst.sshfl [vmem:[#allocation8] sm:$0x33 pattern:$0x76325410] %v1278_v58 }
 0x24e   :  { %1562 = shalt.err (!%p1559_p6)
}
 0x24f   :  { %s1563_s11 = scalar_lea.hbm %s1727_s5, 64 }
 0x250   :  { %p1564_p7 = scmp.ne.s32.totalorder %s1727_s5, %s1563_s11  ;;  %p1567_p8 = scmp.lt.u32.totalorder %s1563_s11, %s1727_s5 }
 0x252   :  { %p1569_p9 = pnand %p1567_p8, %p1564_p7 }
 0x254   :  { %1572 = shalt.err (!%p1569_p9)
}
 0x255   :  { %1297 = dma.vmem_to_hbm [thread:$0]  %s1295_s7, 64, %s1727_s5, [#allocation5]  }
 0x256   :  { %1577 = dma.done.wait [#allocation5], 64  }
 0x257   :  { %1578 = vsyncadd [#allocation5], 4294967232 }
 0x258   :  { %1301 = vsyncpa [#allocation4], 1 }
 0x259   :  { %1302 = vsyncpa [#allocation7], 1 }
 0x25a   :  { %1303 = vsyncpa [#allocation5], 1 }

</bundles_post_ra>
